<compile_context>
chip_gen: v7x
topology: tpu7x:2x2x1
jax: 0.10.0
libtpu: 0.0.40
codegen_flags: <defaults>
</compile_context>

<pallas_src>
import jax
import jax.numpy as jnp
from jax.experimental import pallas as pl
from jax.experimental.pallas import tpu as pltpu


def _mlp_kernel(z_ref,
                w1_ref, b1_ref,
                w2_ref, b2_ref,
                w3_ref, b3_ref,
                w4_ref, b4_ref,
                o_ref):
    """Whole 4-layer MLP for one batch tile, fully in VMEM.

    z_ref  : [block_m, D]          (f32 or bf16; tail rows of the last ragged
                                    tile are undefined -- rows are independent
                                    and those outputs are sliced off)
    wN_ref : [out_N, in_N]         (torch layout, BN folded in; w1 matches z dtype)
    bN_ref : [out_N, 1]            (f32, column so it lane-broadcasts)
    w4_ref : [in_4, 1], b4 : [1,1] (final plain Linear, out_features = 1)
    o_ref  : [1, 1, block_m]       (lane-dense row of per-sample outputs)
    """
    z = z_ref[...]

    # Layer 1: h1[o, m] = sum_k W1[o, k] * z[m, k]   (contracts on k without
    # materializing a transpose of the z tile; MXU, f32 accumulation).
    h = jax.lax.dot_general(
        w1_ref[...], z,
        dimension_numbers=(((1,), (1,)), ((), ())),
        preferred_element_type=jnp.float32)                   # [D/2, block_m]
    h = jnp.maximum(h + b1_ref[...], 0.0)

    # Layer 2 (feature-major: W @ h)
    h = jnp.dot(w2_ref[...], h, preferred_element_type=jnp.float32)
    h = jnp.maximum(h + b2_ref[...], 0.0)                     # [D/8, block_m]

    # Layer 3
    h = jnp.dot(w3_ref[...], h, preferred_element_type=jnp.float32)
    h = jnp.maximum(h + b3_ref[...], 0.0)                     # [D/16, block_m]

    # Layer 4: single output channel, K is tiny (D/16) -> VPU mul + sublane
    # reduce instead of a 1-column MXU matmul.
    out = jnp.sum(h * w4_ref[...], axis=0, keepdims=True) + b4_ref[...]  # [1, block_m]
    o_ref[...] = out.reshape(o_ref.shape).astype(o_ref.dtype)


def _round_up(x, m):
    return ((x + m - 1) // m) * m


def _pick_block_m(n, *, block_m_max=4096, min_blocks=4):
    """Pick a batch tile: as large as possible (amortize the ~0.35 us/step
    pipeline overhead) but keep >= min_blocks grid steps when n allows so the
    parallel batch axis shards across v7x's two TensorCores."""
    bm = _round_up(max(1, pl.cdiv(n, min_blocks)), 128)
    return int(min(block_m_max, max(128, bm)))


def node_num_decoder(z, params, *, block_m=None):
    """Pallas forward of NodeNumDecoder.

    z       : [N, latent_dim], f32 or bf16.  bf16 streaming is only a win if
              z already lives in bf16 in HBM (cast at the producer); this
              wrapper never re-casts z (that would add a full HBM pass).
    params  : folded params from fold_params()
    block_m : batch rows per grid step (multiple of 128).  Default: auto
              (cap 4096, keep >= 4 grid steps for v7x megacore).
    """
    (w1, b1, w2, b2, w3, b3, w4, b4) = params
    n, d = z.shape

    if block_m is None:
        block_m = _pick_block_m(n)
    assert block_m % 128 == 0, "block_m must be a multiple of 128"

    num_blocks = pl.cdiv(n, block_m)

    # Match the (tiny, resident) W1 to z's storage dtype so the MXU sees one
    # operand dtype; accumulation stays f32 inside the kernel.
    if z.dtype != w1.dtype:
        w1 = w1.astype(z.dtype)

    def resident(a):
        nd = a.ndim
        return pl.BlockSpec(a.shape, lambda i, _nd=nd: (0,) * _nd)

    weight_bytes = sum(int(a.size) * a.dtype.itemsize
                       for a in (w1, b1, w2, b2, w3, b3, w4, b4))
    flops = 2 * n * (d * (d // 2) + (d // 2) * (d // 8)
                     + (d // 8) * (d // 16) + (d // 16))
    bytes_accessed = n * d * z.dtype.itemsize + n * 4 + weight_bytes
    cost = pl.CostEstimate(flops=flops, transcendentals=0,
                           bytes_accessed=bytes_accessed)

    out = pl.pallas_call(
        _mlp_kernel,
        out_shape=jax.ShapeDtypeStruct((num_blocks, 1, block_m), jnp.float32),
        grid_spec=pltpu.PrefetchScalarGridSpec(
            num_scalar_prefetch=0,
            grid=(num_blocks,),
            in_specs=[
                pl.BlockSpec((block_m, d), lambda i: (i, 0)),   # z batch tile (ragged tail OK)
                resident(w1), resident(b1),
                resident(w2), resident(b2),
                resident(w3), resident(b3),
                resident(w4), resident(b4),
            ],
            out_specs=pl.BlockSpec((1, 1, block_m), lambda i: (i, 0, 0)),
        ),
        compiler_params=pltpu.CompilerParams(
            # Batch axis is embarrassingly parallel -> shards across the two
            # TensorCores on v7x megacore; harmless on v5e/v6e.
            dimension_semantics=("parallel",)),
        cost_estimate=cost,
    )(z, w1, b1, w2, b2, w3, b3, w4, b4)

    # Tail rows (computed from undefined ragged-tile data) are discarded here.
    return out.reshape(num_blocks * block_m, 1)[:n]


# ----------------------------------------------------------------------------
# Parameter construction (torch-like raw params) + offline BN/bias folding.
# ----------------------------------------------------------------------------
_BN_EPS = 1e-5


def make_raw_params(latent_dim, key):
    """Synthetic parameters with the same shapes/semantics as the torch module."""
    dims = [latent_dim, latent_dim // 2, latent_dim // 8, latent_dim // 16, 1]
    keys = jax.random.split(key, 24)
    ki = 0
    hidden = []
    for li in range(3):
        fi, fo = dims[li], dims[li + 1]
        bound = 1.0 / (fi ** 0.5)
        w = jax.random.uniform(keys[ki], (fo, fi), jnp.float32, -bound, bound); ki += 1
        b = jax.random.uniform(keys[ki], (fo,), jnp.float32, -bound, bound); ki += 1
        gamma = 1.0 + 0.1 * jax.random.normal(keys[ki], (fo,)); ki += 1
        beta = 0.1 * jax.random.normal(keys[ki], (fo,)); ki += 1
        rmean = 0.05 * jax.random.normal(keys[ki], (fo,)); ki += 1
        rvar = 1.0 + 0.1 * jax.random.uniform(keys[ki], (fo,)); ki += 1
        hidden.append((w, b, gamma.astype(jnp.float32), beta.astype(jnp.float32),
                       rmean.astype(jnp.float32), rvar.astype(jnp.float32)))
    fi, fo = dims[3], dims[4]
    bound = 1.0 / (fi ** 0.5)
    wl = jax.random.uniform(keys[ki], (fo, fi), jnp.float32, -bound, bound); ki += 1
    bl = jax.random.uniform(keys[ki], (fo,), jnp.float32, -bound, bound); ki += 1
    return hidden, (wl, bl)


def fold_params(raw):
    """Fold eval-mode BatchNorm + bias into the Linear weights (one-time)."""
    hidden, (wl, bl) = raw
    folded = []
    for (w, b, gamma, beta, rmean, rvar) in hidden:
        s = gamma * jax.lax.rsqrt(rvar + _BN_EPS)                 # [out]
        wf = (w * s[:, None]).astype(jnp.float32)                 # [out, in]
        bf = ((b - rmean) * s + beta).astype(jnp.float32)         # [out]
        folded.append(wf)
        folded.append(bf[:, None])                                # column [out, 1]
    folded.append(jnp.transpose(wl).astype(jnp.float32))          # [in, 1]
    folded.append(bl.reshape(1, 1).astype(jnp.float32))           # [1, 1]
    return tuple(folded)


def reference_forward(z, raw):
    """Plain-JAX reference using the raw (unfolded) parameters."""
    hidden, (wl, bl) = raw
    h = z
    for (w, b, gamma, beta, rmean, rvar) in hidden:
        h = h @ w.T + b
        h = (h - rmean) * jax.lax.rsqrt(rvar + _BN_EPS) * gamma + beta
        h = jnp.maximum(h, 0.0)
    return h @ wl.T + bl


if __name__ == "__main__":
    latent_dim = 128      # hidden sizes 64, 16, 8 -> output 1
    batch = 200           # deliberately NOT a multiple of 128 (tests ragged tile)

    key = jax.random.PRNGKey(0)
    kz, kp = jax.random.split(key)
    z = jax.random.normal(kz, (batch, latent_dim), dtype=jnp.float32)
    raw = make_raw_params(latent_dim, kp)
    params = fold_params(raw)

    ref = reference_forward(z, raw)

    # f32 path, auto block_m (-> 128, 2 ragged-tail blocks for this batch).
    out = jax.block_until_ready(node_num_decoder(z, params))
    assert out.shape == (batch, 1)
    assert jnp.allclose(out, ref, atol=5e-4, rtol=5e-4), "f32 mismatch vs reference"

    # Explicit large-tile config (exercises the block_m kwarg / single-block grid).
    out_big = jax.block_until_ready(node_num_decoder(z, params, block_m=256))
    assert jnp.allclose(out_big, ref, atol=5e-4, rtol=5e-4), "block_m=256 mismatch"

    # bf16 streaming path: z already lives in bf16 (cast at the "producer"),
    # the wrapper does not re-cast; MXU runs bf16 with f32 accumulation.
    z_bf16 = z.astype(jnp.bfloat16)
    out_bf16 = jax.block_until_ready(node_num_decoder(z_bf16, params))
    assert out_bf16.shape == (batch, 1)
    assert jnp.allclose(out_bf16, ref, atol=5e-2, rtol=5e-2), "bf16 mismatch vs reference"

    print("KERNEL_OK")
</pallas_src>

<mosaic_0001>
module attributes {stable_mosaic.version = 11 : i64} {
  func.func @_mlp_kernel(%arg0: i32, %arg1: memref<128x128xf32, #tpu.memory_space<vmem>>, %arg2: memref<64x128xf32, #tpu.memory_space<vmem>>, %arg3: memref<64x1xf32, #tpu.memory_space<vmem>>, %arg4: memref<16x64xf32, #tpu.memory_space<vmem>>, %arg5: memref<16x1xf32, #tpu.memory_space<vmem>>, %arg6: memref<8x16xf32, #tpu.memory_space<vmem>>, %arg7: memref<8x1xf32, #tpu.memory_space<vmem>>, %arg8: memref<8x1xf32, #tpu.memory_space<vmem>>, %arg9: memref<1x1xf32, #tpu.memory_space<vmem>>, %arg10: memref<1x1x128xf32, #tpu.memory_space<vmem>>) attributes {dimension_semantics = [#tpu.dimension_semantics<parallel>], iteration_bounds = array<i64: 2>, scalar_prefetch = 0 : i64, scratch_operands = 0 : i64, tpu.core_type = #tpu.core_type<tc>, window_params = [{transform_indices = @transform_0, window_bounds = array<i64: 128, 128>}, {pipeline_mode = #tpu.pipeline_mode<synchronous>, transform_indices = @transform_1, window_bounds = array<i64: 64, 128>}, {pipeline_mode = #tpu.pipeline_mode<synchronous>, transform_indices = @transform_2, window_bounds = array<i64: 64, 1>}, {pipeline_mode = #tpu.pipeline_mode<synchronous>, transform_indices = @transform_3, window_bounds = array<i64: 16, 64>}, {pipeline_mode = #tpu.pipeline_mode<synchronous>, transform_indices = @transform_4, window_bounds = array<i64: 16, 1>}, {pipeline_mode = #tpu.pipeline_mode<synchronous>, transform_indices = @transform_5, window_bounds = array<i64: 8, 16>}, {pipeline_mode = #tpu.pipeline_mode<synchronous>, transform_indices = @transform_6, window_bounds = array<i64: 8, 1>}, {pipeline_mode = #tpu.pipeline_mode<synchronous>, transform_indices = @transform_7, window_bounds = array<i64: 8, 1>}, {pipeline_mode = #tpu.pipeline_mode<synchronous>, transform_indices = @transform_8, window_bounds = array<i64: 1, 1>}, {transform_indices = @transform_9, window_bounds = array<i64: 1, 1, 128>}]} {
    %c0 = arith.constant 0 : index
    %c0_0 = arith.constant 0 : index
    %0 = vector.load %arg1[%c0, %c0_0] : memref<128x128xf32, #tpu.memory_space<vmem>>, vector<128x128xf32>
    %c0_1 = arith.constant 0 : index
    %c0_2 = arith.constant 0 : index
    %1 = vector.load %arg2[%c0_1, %c0_2] : memref<64x128xf32, #tpu.memory_space<vmem>>, vector<64x128xf32>
    %cst = arith.constant dense<0.000000e+00> : vector<64x128xf32>
    %2 = tpu.matmul %1, %0, %cst {dimension_numbers = #tpu.dot_dimension_numbers<[1], [1], [0], [0], [0, 0, 1, 0], [], []>} : vector<64x128xf32>, vector<128x128xf32>, vector<64x128xf32> -> vector<64x128xf32>
    %c0_3 = arith.constant 0 : index
    %c0_4 = arith.constant 0 : index
    %3 = vector.load %arg3[%c0_3, %c0_4] : memref<64x1xf32, #tpu.memory_space<vmem>>, vector<64x1xf32>
    %4 = vector.broadcast %3 : vector<64x1xf32> to vector<64x128xf32>
    %5 = arith.addf %2, %4 : vector<64x128xf32>
    %cst_5 = arith.constant 0.000000e+00 : f32
    %6 = vector.broadcast %cst_5 : f32 to vector<64x128xf32>
    %7 = arith.maximumf %5, %6 : vector<64x128xf32>
    %c0_6 = arith.constant 0 : index
    %c0_7 = arith.constant 0 : index
    %8 = vector.load %arg4[%c0_6, %c0_7] : memref<16x64xf32, #tpu.memory_space<vmem>>, vector<16x64xf32>
    %cst_8 = arith.constant dense<0.000000e+00> : vector<16x128xf32>
    %9 = tpu.matmul %8, %7, %cst_8 {dimension_numbers = #tpu.dot_dimension_numbers<[1], [0], [0], [1], [0, 0, 1, 1], [], []>} : vector<16x64xf32>, vector<64x128xf32>, vector<16x128xf32> -> vector<16x128xf32>
    %c0_9 = arith.constant 0 : index
    %c0_10 = arith.constant 0 : index
    %10 = vector.load %arg5[%c0_9, %c0_10] : memref<16x1xf32, #tpu.memory_space<vmem>>, vector<16x1xf32>
    %11 = vector.broadcast %10 : vector<16x1xf32> to vector<16x128xf32>
    %12 = arith.addf %9, %11 : vector<16x128xf32>
    %cst_11 = arith.constant 0.000000e+00 : f32
    %13 = vector.broadcast %cst_11 : f32 to vector<16x128xf32>
    %14 = arith.maximumf %12, %13 : vector<16x128xf32>
    %c0_12 = arith.constant 0 : index
    %c0_13 = arith.constant 0 : index
    %15 = vector.load %arg6[%c0_12, %c0_13] : memref<8x16xf32, #tpu.memory_space<vmem>>, vector<8x16xf32>
    %cst_14 = arith.constant dense<0.000000e+00> : vector<8x128xf32>
    %16 = tpu.matmul %15, %14, %cst_14 {dimension_numbers = #tpu.dot_dimension_numbers<[1], [0], [0], [1], [0, 0, 1, 1], [], []>} : vector<8x16xf32>, vector<16x128xf32>, vector<8x128xf32> -> vector<8x128xf32>
    %c0_15 = arith.constant 0 : index
    %c0_16 = arith.constant 0 : index
    %17 = vector.load %arg7[%c0_15, %c0_16] : memref<8x1xf32, #tpu.memory_space<vmem>>, vector<8x1xf32>
    %18 = vector.broadcast %17 : vector<8x1xf32> to vector<8x128xf32>
    %19 = arith.addf %16, %18 : vector<8x128xf32>
    %cst_17 = arith.constant 0.000000e+00 : f32
    %20 = vector.broadcast %cst_17 : f32 to vector<8x128xf32>
    %21 = arith.maximumf %19, %20 : vector<8x128xf32>
    %c0_18 = arith.constant 0 : index
    %c0_19 = arith.constant 0 : index
    %22 = vector.load %arg8[%c0_18, %c0_19] : memref<8x1xf32, #tpu.memory_space<vmem>>, vector<8x1xf32>
    %23 = vector.broadcast %22 : vector<8x1xf32> to vector<8x128xf32>
    %24 = arith.mulf %21, %23 : vector<8x128xf32>
    %cst_20 = arith.constant dense<0.000000e+00> : vector<128xf32>
    %25 = vector.multi_reduction <add>, %24, %cst_20 [0] : vector<8x128xf32> to vector<128xf32>
    %26 = vector.shape_cast %25 : vector<128xf32> to vector<1x128xf32>
    %c0_21 = arith.constant 0 : index
    %c0_22 = arith.constant 0 : index
    %27 = vector.load %arg9[%c0_21, %c0_22] : memref<1x1xf32, #tpu.memory_space<vmem>>, vector<1x1xf32>
    %28 = vector.broadcast %27 : vector<1x1xf32> to vector<1x128xf32>
    %29 = arith.addf %26, %28 : vector<1x128xf32>
    %30 = vector.shape_cast %29 : vector<1x128xf32> to vector<1x1x128xf32>
    %c0_23 = arith.constant 0 : index
    %c0_24 = arith.constant 0 : index
    %c0_25 = arith.constant 0 : index
    %31 = vector.load %arg10[%c0_23, %c0_24, %c0_25] : memref<1x1x128xf32, #tpu.memory_space<vmem>>, vector<1x1x128xf32>
    tpu.vector_store %arg10[%c0_23, %c0_24, %c0_25], %30 {strides = array<i32>} : memref<1x1x128xf32, #tpu.memory_space<vmem>>, vector<1x1x128xf32>,
    return
  }
  func.func @transform_0(%arg0: i32) -> (i32, i32) {
    %c0_i32 = arith.constant 0 : i32
    %c0_i32_0 = arith.constant 0 : i32
    return %arg0, %c0_i32 : i32, i32
  }
  func.func @transform_1(%arg0: i32) -> (i32, i32) {
    %c0_i32 = arith.constant 0 : i32
    %c0_i32_0 = arith.constant 0 : i32
    %c0_i32_1 = arith.constant 0 : i32
    return %c0_i32, %c0_i32_0 : i32, i32
  }
  func.func @transform_2(%arg0: i32) -> (i32, i32) {
    %c0_i32 = arith.constant 0 : i32
    %c0_i32_0 = arith.constant 0 : i32
    %c0_i32_1 = arith.constant 0 : i32
    return %c0_i32, %c0_i32_0 : i32, i32
  }
  func.func @transform_3(%arg0: i32) -> (i32, i32) {
    %c0_i32 = arith.constant 0 : i32
    %c0_i32_0 = arith.constant 0 : i32
    %c0_i32_1 = arith.constant 0 : i32
    return %c0_i32, %c0_i32_0 : i32, i32
  }
  func.func @transform_4(%arg0: i32) -> (i32, i32) {
    %c0_i32 = arith.constant 0 : i32
    %c0_i32_0 = arith.constant 0 : i32
    %c0_i32_1 = arith.constant 0 : i32
    return %c0_i32, %c0_i32_0 : i32, i32
  }
  func.func @transform_5(%arg0: i32) -> (i32, i32) {
    %c0_i32 = arith.constant 0 : i32
    %c0_i32_0 = arith.constant 0 : i32
    %c0_i32_1 = arith.constant 0 : i32
    return %c0_i32, %c0_i32_0 : i32, i32
  }
  func.func @transform_6(%arg0: i32) -> (i32, i32) {
    %c0_i32 = arith.constant 0 : i32
    %c0_i32_0 = arith.constant 0 : i32
    %c0_i32_1 = arith.constant 0 : i32
    return %c0_i32, %c0_i32_0 : i32, i32
  }
  func.func @transform_7(%arg0: i32) -> (i32, i32) {
    %c0_i32 = arith.constant 0 : i32
    %c0_i32_0 = arith.constant 0 : i32
    %c0_i32_1 = arith.constant 0 : i32
    return %c0_i32, %c0_i32_0 : i32, i32
  }
  func.func @transform_8(%arg0: i32) -> (i32, i32) {
    %c0_i32 = arith.constant 0 : i32
    %c0_i32_0 = arith.constant 0 : i32
    %c0_i32_1 = arith.constant 0 : i32
    return %c0_i32, %c0_i32_0 : i32, i32
  }
  func.func @transform_9(%arg0: i32) -> (i32, i32, i32) {
    %c0_i32 = arith.constant 0 : i32
    %c0_i32_0 = arith.constant 0 : i32
    %c0_i32_1 = arith.constant 0 : i32
    return %arg0, %c0_i32, %c0_i32_0 : i32, i32, i32
  }
}

</mosaic_0001>

<bundles_post_ra>
// kernel: tpu_custom_call.1
= control target key start
LH: loop header
LB: loop body
LE: loop exit
PB: predicated region body
PF: predicated region fallthrough
CT: control target
= control target key end

     0   :  { %s1460_s0 = inlined_call_operand.hbm [shape: f32[200,128], index: 0, kind: input, shape index: {}]   ;;  %s1461_s1 = inlined_call_operand.vmem [shape: f32[64,128], index: 1, kind: input, shape index: {}]   ;;  %s1462_s2 = inlined_call_operand.vmem [shape: f32[64,1], index: 2, kind: input, shape index: {}]   ;;  %s1463_s3 = inlined_call_operand.vmem [shape: f32[16,64], index: 3, kind: input, shape index: {}]   ;;  %s1464_s4 = inlined_call_operand.vmem [shape: f32[16,1], index: 4, kind: input, shape index: {}]   ;;  %s1465_s5 = inlined_call_operand.vmem [shape: f32[8,16], index: 5, kind: input, shape index: {}]   ;;  %s1466_s6 = inlined_call_operand.vmem [shape: f32[8,1], index: 6, kind: input, shape index: {}]   ;;  %s1467_s7 = inlined_call_operand.vmem [shape: f32[8,1], index: 7, kind: input, shape index: {}]   ;;  %s1468_s8 = inlined_call_operand.<no memory space> [shape: f32[1,1], index: 8, kind: input, shape index: {}]   ;;  %s1469_s9 = inlined_call_operand.hbm [shape: f32[2,1,128], index: 9, kind: output, shape index: {}]  }
   0x1   :  { %v14_v0 = vstv %s1468_s8 }
   0x2   :  { %15 = vst [vmem:[#allocation2] sm:$0x1] %v14_v0 }
   0x3   :  { %16 = vsyncpa [#allocation4], 0 }
   0x4   :  { %18 = vsyncpa [#allocation4 + $0x1], 0 }
   0x5   :  { %19 = vsyncpa [#allocation5], 0 }
   0x6   :  { %21 = vsyncpa [#allocation5 + $0x1], 0  ;;  %s1214_s11 = smov 0   ;;  %s1216_s12 = smov 0  }
   0x7   :  { %s1218_s13 = smov 0   ;;  %s1220_s14 = smov 0  }
   0x8 LB: > { %s1235_s8 = sadd.s32 4294967295, %s1151_s14   ;;  %s832_s15 = sadd.s32 4294967294, %s1151_s14   ;;  %s1151_s14 = sphi %s1220_s14, %s1481_s14   ;;  %s1147_s13 = sphi %s1218_s13, %s1480_s13   ;;  %s1143_s12 = sphi %s1216_s12, %s1479_s12   ;;  %s1139_s11 = sphi %s1214_s11, %s1478_s11  }
   0x9   : > { %s1239_s16 = sadd.s32 1, %s1151_s14   ;;  %s34_s17 = sadd.s32 1, %s1147_s13 }
   0xa   : > { %s31_s18 = ssub.s32 %s1151_s14, %s1239_s16  ;;  %p41_p0 = scmp.ne.s32.totalorder %s1147_s13, %s1143_s12 }
   0xb   : > { %p32_p1 = scmp.eq.s32.totalorder %s31_s18, 0  ;;  %p42_p2 = scmp.eq.s32.totalorder %s1151_s14, 0 }
   0xc   : > { %p47_p3 = scmp.ne.s32.totalorder %s1143_s12, %s1139_s11  ;;  %p48_p4 = scmp.eq.s32.totalorder %s1235_s8, 0 }
   0xd   : > { %s1251_s19 = scalar_select %p32_p1, %s1147_s13, %s34_s17  }
   0xe   : > { %p43_p5 = por %p42_p2, %p41_p0  ;;  %p1253_p6 = por %p48_p4, %p47_p3 }
   0xf   : > { %1471 = sst [smem:[#allocation9_spill]] %s1251_s19  ;;  %p239_p7 = scmp.eq.s32.totalorder %s1235_s8, 1 }
  0x10   : > { %p245_p8 = scmp.eq.s32.totalorder %s832_s15, 1  ;;  %p1470_p11 = scmp.ge.s32.totalorder %s1151_s14, 2 }
  0x11   : > { %p1258_p9 = por %p239_p7, %p41_p0 }
  0x12   : > { %p1262_p10 = por %p245_p8, %p47_p3  ;;  %285 = sbr.rel (%p1470_p11) target bundleno = 60 (0x3c), region = 48 }
  0x14   : > { %s1474_s22 = scalar_select %p1262_p10, 1, 0 }
  0x19   : > { %288 = sbr.rel (!%p43_p5) target bundleno = 60 (0x3c), region = 52  ;;  %s289_s23 = sand.u32 (%p43_p5), 1, %s1147_s13  }
  0x1a   : > { %s836_s24 = sshll.u32 (%p43_p5), %s1151_s14, 4  ;;  %s835_s25 = sshll.u32 (%p43_p5), %s289_s23, 7 }
  0x1b   : > { %s295_s26 = ssub.s32 (%p43_p5), 25, %s836_s24  ;;  %s1274_s29 = scalar_lea.sflag (%p43_p5), [#allocation4], %s289_s23 }
  0x1c   : > { %p296_p12 = scmp.lt.s32.totalorder (%p43_p5), %s295_s26, 16  ;;  %s293_s30 = scalar_lea.vmem (%p43_p5), [#allocation3], %s835_s25 }
  0x20   : > { %s1483_s26 = smov (!%p296_p12, %s295_s26), 16 }
  0x21   : > { %s1271_s27 = sshll.u32 %s1483_s26, 7 }
  0x22   : > { %s300_s28 = ssub.s32 2048, %s1271_s27 }
  0x23   : > { %301 = vsyncadd %s1274_s29, %s300_s28  ;;  %p838_p13 = scmp.ne.s32.totalorder %s1271_s27, 0  ;;  %s850_s10 = sshll.u32 %s1151_s14, 11 }
  0x24   : > { %s1282_s18 = scalar_lea.hbm %s1460_s0, %s850_s10  ;;  %s306_s23 = sshll.u32 %s293_s30, 4  ;;  %s1284_s23 = int_to_ptr.vmem [resolvable:$true] %s306_s23 }
  0x25   : > { %s1057_s24 = scalar_lea.hbm %s1282_s18, %s1271_s27  ;;  %s1061_s28 = scalar_lea.hbm %s1460_s0, 3200 }
  0x26   : > { %p1058_p0 = scmp.ne.s32.totalorder %s1282_s18, %s1057_s24  ;;  %p1062_p3 = scmp.lt.u32.totalorder %s1282_s18, %s1460_s0 }
  0x27   : > { %p1063_p4 = scmp.lt.u32.totalorder %s1061_s28, %s1057_s24  ;;  %p1065_p7 = scmp.lt.u32.totalorder %s1057_s24, %s1282_s18 }
  0x28   : > { %p1059_p1 = pnand %p1058_p0, %p838_p13 }
  0x29   : > { %p1064_p5 = por %p1063_p4, %p1062_p3 }
  0x2a   : > { %p1060_p2 = pneg %p1059_p1 }
  0x2b   : > { %p1066_p8 = por %p1065_p7, %p1064_p5 }
  0x2d   : > { %p1067_p12 = pnand %p1066_p8, %p1060_p2 }
  0x2f   : > { %1070 = shalt.err (!%p1067_p12)
}
  0x30   : > { %s1071_s30 = scalar_lea.vmem %s1284_s23, %s1271_s27  ;;  %s1153_s10 = smov [#allocation3]  }
  0x31   : > { %p1072_p0 = scmp.ne.s32.totalorder %s1284_s23, %s1071_s30  ;;  %s1075_s17 = sshll.u32 %s1153_s10, 4  ;;  %s1076_s17 = int_to_ptr.vmem [resolvable:$false] %s1075_s17 }
  0x32   : > { %s1077_s19 = scalar_lea.vmem %s1076_s17, 4096  ;;  %p1078_p10 = scmp.lt.s32.totalorder %s1284_s23, %s1076_s17 }
  0x33   : > { %p1073_p1 = pnand %p1072_p0, %p838_p13  ;;  %p1079_p3 = scmp.lt.s32.totalorder %s1077_s19, %s1071_s30 }
  0x35   : > { %p1074_p11 = pneg %p1073_p1  ;;  %p1080_p4 = por %p1079_p3, %p1078_p10 }
  0x37   : > { %p1081_p5 = pnand %p1080_p4, %p1074_p11 }
  0x39   : > { %1084 = shalt.err (!%p1081_p5)
}
  0x3a   : > { %s1154_s24 = smov 128   ;;  %s1155_s25 = smov 8  }
  0x3b   : > { %312 = dma.hbm_to_vmem [thread:$0]  (%p838_p13), %s1282_s18, %s1271_s27, %s1284_s23, %s1274_s29, %s1154_s24, %s1154_s24, %s1155_s25  }
  0x3c PF: > { %p842_p2 = scmp.ge.s32.totalorder %s1151_s14, 1  ;;  %p314_p7 = scmp.lt.s32.totalorder %s1151_s14, 3 }
  0x3e   : > { %p315_p8 = pnand %p842_p2, %p314_p7 }
  0x3f   : > { %s1314_s26 = sand.u32 (!%p315_p8), 1, %s1143_s12  }
  0x40   : > { %318 = sbr.rel (%p315_p8) target bundleno = 842 (0x34a), region = 56  ;;  %s843_s28 = sshll.u32 (!%p315_p8), %s1314_s26, 7 }
  0x41   : > { %s321_s15 = scalar_lea.sflag (!%p315_p8), [#allocation4], %s1314_s26  ;;  %s1318_s30 = scalar_lea.vmem (!%p315_p8), [#allocation3], %s843_s28 }
  0x47   : > { %1130 = dma.done.wait (%p1253_p6), %s321_s15, 2048  }
  0x48   : > { %1132 = vsyncadd (%p1253_p6), %s321_s15, 4294965248  ;;  %v1156_v1 = vmov 0   ;;  %v363_v2 = vld [vmem:[%s1318_s30] sm:$0xff]  ;;  %v364_v3 = vld [vmem:[%s1318_s30 + $0x8] sm:$0xff]  ;;  %vm562_vm0 = vcmask 523264   ;;  %vm1158_vm1 = vmmov 0  }
  0x49   : > { %1055 = vset.pattern.permute.xlu0 %v1156_v1  ;;  %1056 = vset.pattern.permute.xlu1 %v1156_v1  ;;  %v365_v4 = vld [vmem:[%s1318_s30 + $0x10] sm:$0xff]  ;;  %v958_v5 = vpack.c.bf16 %v364_v3, %v363_v2  ;;  %v366_v6 = vld [vmem:[%s1318_s30 + $0x18] sm:$0xff]  ;;  %v367_v9 = vld [vmem:[%s1318_s30 + $0x20] sm:$0xff]  ;;  %vm653_vm2 = vcmask 130048   ;;  %s357_s25 = scalar_lea.vmem [#allocation6], %s1314_s26  ;;  %s754_s29 = scalar_lea.sflag [#allocation5], %s1314_s26 }
  0x4a   : > { %v962_v7 = vpack.c.bf16 %v366_v6, %v365_v4  ;;  %v379_v8 = vld [vmem:[%s1461_s1] sm:$0xff]  ;;  %v368_v10 = vld [vmem:[%s1318_s30 + $0x28] sm:$0xff]  ;;  %v390_v15 = vld [vmem:[%s1462_s2 + $0x18] sm:$0xff]  ;;  %s766_s28 = sshll.u32 %s357_s25, 4  ;;  %s1418_s28 = int_to_ptr.vmem [resolvable:$true] %s766_s28 }
  0x4b   : > { %959 = vmatprep.subr.bf16.mxu0 %v958_v5  ;;  %920 = vmatprep.mubr.f32.mxu0 %v379_v8  ;;  %v387_v11 = vld [vmem:[%s1462_s2] sm:$0xff]  ;;  %v389_v12 = vld [vmem:[%s1462_s2 + $0x10] sm:$0xff]  ;;  %v966_v13 = vpack.c.bf16 %v368_v10, %v367_v9  ;;  %v388_v14 = vld [vmem:[%s1462_s2 + $0x8] sm:$0xff]  ;;  %s1085_s18 = scalar_lea.vmem %s1418_s28, 16 }
  0x4c   : > { %961 = vmatpush3.bf16.xpose.msra.mxu0 %v958_v5  ;;  %397 = vperm.xlu0 %1055, %v387_v11   ;;  %v369_v16 = vld [vmem:[%s1318_s30 + $0x30] sm:$0xff]  ;;  %v370_v17 = vld [vmem:[%s1318_s30 + $0x38] sm:$0xff]  ;;  %v392_v19 = vld [vmem:[%s1462_s2 + $0x28] sm:$0xff]  ;;  %p1086_p6 = scmp.ne.s32.totalorder %s1418_s28, %s1085_s18 }
  0x4d   : > { %963 = vmatprep.subr.bf16.mxu0 %v962_v7  ;;  %407 = vperm.xlu1 %1056, %v389_v12   ;;  %v391_v18 = vld [vmem:[%s1462_s2 + $0x20] sm:$0xff]  ;;  %v970_v20 = vpack.c.bf16 %v370_v17, %v369_v16  ;;  %v393_v21 = vld [vmem:[%s1462_s2 + $0x30] sm:$0xff]  ;;  %v394_v22 = vld [vmem:[%s1462_s2 + $0x38] sm:$0xff] }
  0x4e   : > { %v371_v23 = vld [vmem:[%s1318_s30 + $0x40] sm:$0xff]  ;;  %v372_v24 = vld [vmem:[%s1318_s30 + $0x48] sm:$0xff]  ;;  %v373_v30 = vld [vmem:[%s1318_s30 + $0x50] sm:$0xff]  ;;  %p1087_p10 = pnand %p1086_p6, %p1258_p9 }
  0x4f   : > { %v550_v25 = vld [vmem:[%s1464_s4] sm:$0xff]  ;;  %v551_v26 = vld [vmem:[%s1464_s4 + $0x8] sm:$0xff]  ;;  %v974_v27 = vpack.c.bf16 %v372_v24, %v371_v23  ;;  %v377_v37 = vld [vmem:[%s1318_s30 + $0x70] sm:$0xff] }
  0x50   : > { %402 = vperm.xlu0 %1055, %v388_v14   ;;  %v647_v28 = vld [vmem:[%s1466_s6] sm:$0xff]  ;;  %v376_v35 = vld [vmem:[%s1318_s30 + $0x68] sm:$0xff]  ;;  %v382_v42 = vld [vmem:[%s1461_s1 + $0x18] sm:$0xff]  ;;  %p1088_p11 = pneg %p1087_p10 }
  0x51   : > { %412 = vperm.xlu1 %1056, %v390_v15   ;;  %v728_v29 = vld [vmem:[%s1467_s7] sm:$0xff]  ;;  %v380_v40 = vld [vmem:[%s1461_s1 + $0x8] sm:$0xff]  ;;  %v381_v41 = vld [vmem:[%s1461_s1 + $0x10] sm:$0xff] }
  0x52   : > { %v374_v31 = vld [vmem:[%s1318_s30 + $0x58] sm:$0xff]  ;;  %v375_v34 = vld [vmem:[%s1318_s30 + $0x60] sm:$0xff]  ;;  %v385_v45 = vld [vmem:[%s1461_s1 + $0x30] sm:$0xff] }
  0x53   : > { %v741_v32 = vld [vmem:[#allocation2] sm:$0x1]  ;;  %v978_v33 = vpack.c.bf16 %v374_v31, %v373_v30  ;;  %v982_v36 = vpack.c.bf16 %v376_v35, %v375_v34  ;;  %v384_v44 = vld [vmem:[%s1461_s1 + $0x28] sm:$0xff]  ;;  %v386_v46 = vld [vmem:[%s1461_s1 + $0x38] sm:$0xff] }
  0x54   : > { %965 = vmatpush3.bf16.xpose.msra.mxu0 %v962_v7  ;;  %417 = vperm.xlu0 %1055, %v391_v18   ;;  %v378_v38 = vld [vmem:[%s1318_s30 + $0x78] sm:$0xff]  ;;  %s847_s30 = sshll.u32 %s1235_s8, 4  ;;  %s1160_s8 = smov [#allocation6]  }
  0x55   : > { %967 = vmatprep.subr.bf16.mxu0 %v966_v13  ;;  %422 = vperm.xlu1 %1056, %v392_v19   ;;  %v986_v39 = vpack.c.bf16 %v378_v38, %v377_v37  ;;  %v383_v43 = vld [vmem:[%s1461_s1 + $0x20] sm:$0xff]  ;;  %s1416_s27 = scalar_lea.hbm %s1469_s9, %s847_s30  ;;  %s1089_s23 = sshll.u32 %s1160_s8, 4  ;;  %s1090_s23 = int_to_ptr.vmem [resolvable:$false] %s1089_s23 }
  0x56   : > { %v548_v47 = vld [vmem:[%s1463_s3] sm:$0xff]  ;;  %s1091_s10 = scalar_lea.vmem %s1090_s23, 32  ;;  %p1092_p13 = scmp.lt.s32.totalorder %s1418_s28, %s1090_s23 }
  0x57   : > { %948 = vmatprep.mubr.msk.f32.mxu1 %vm562_vm0, %v548_v47  ;;  %p1093_p12 = scmp.lt.s32.totalorder %s1091_s10, %s1085_s18 }
  0x58   : > { %427 = vperm.xlu0 %1055, %v393_v21   ;;  %v1157_v21 = vmov 0.0|0.0  }
  0x59   : > { %432 = vperm.xlu1 %1056, %v394_v22   ;;  %v1159_v22 = vmov 0.0   ;;  %p1094_p0 = por %p1093_p12, %p1092_p13 }
  0x5b   : > { %p1095_p1 = pnand %p1094_p0, %p1088_p11 }
  0x5c   : > { %969 = vmatpush3.bf16.xpose.msra.mxu0 %v966_v13  ;;  %554 = vperm.xlu0 %1055, %v550_v25  }
  0x5d   : > { %971 = vmatprep.subr.bf16.mxu0 %v970_v20  ;;  %559 = vperm.xlu1 %1056, %v551_v26  }
  0x60   : > { %650 = vperm.xlu0 %1055, %v647_v28  }
  0x61   : > { %731 = vperm.xlu1 %1056, %v728_v29  }
  0x64   : > { %973 = vmatpush3.bf16.xpose.msra.mxu0 %v970_v20  ;;  %744 = vperm.xlu0 %1055, %v741_v32   ;;  %v549_v20 = vld [vmem:[%s1463_s3 + $0x8] sm:$0xff]  ;;  %v646_v32 = vld [vmem:[%s1465_s5] sm:$0xff] }
  0x65   : > { %975 = vmatprep.subr.bf16.mxu0 %v974_v27 }
  0x6c   : > { %977 = vmatpush3.bf16.xpose.msra.mxu0 %v974_v27 }
  0x6d   : > { %979 = vmatprep.subr.bf16.mxu0 %v978_v33 }
  0x74   : > { %981 = vmatpush3.bf16.xpose.msra.mxu0 %v978_v33 }
  0x75   : > { %983 = vmatprep.subr.bf16.mxu0 %v982_v36 }
  0x7c   : > { %985 = vmatpush3.bf16.xpose.msra.mxu0 %v982_v36 }
  0x7d   : > { %987 = vmatprep.subr.bf16.mxu0 %v986_v39 }
  0x84   : > { %989 = vmatpush3.bf16.xpose.msra.mxu0 %v986_v39  ;;  %v747_v39 = vlaneseq }
  0x8b   : > { %921 = vmatmul.mubr.f32.vlgmr.msra.gmra.mrb[0].mxu0 %v380_v40 }
  0x8c   : > { %923 = vmatprep.mubr.f32.mxu0 %v381_v41 }
  0x8f   : > { %924 = vmatmul.mubr.f32.gmra.mrb[2].mxu0 %v382_v42  ;;  %v748_v42 = vshrl.u32 %v747_v39, 7 }
  0x90   : > { %926 = vmatprep.mubr.f32.mxu0 %v383_v43 }
  0x93   : > { %927 = vmatmul.mubr.f32.gmra.mrb[4].mxu0 %v384_v44 }
  0x94   : > { %929 = vmatprep.mubr.f32.mxu0 %v385_v45  ;;  %v749_v45 = vsub.s32 0, %v748_v42 }
  0x97   : > { %930 = vmatmul.mubr.f32.gmra.mrb[6].mxu0 %v386_v46 }
  0xcb   : > { %v398_v48 = vpop.permute.xlu0 %397 }
  0xcc   : > { %v408_v49 = vpop.permute.xlu1 %407 }
  0xcf   : > { %v403_v50 = vpop.permute.xlu0 %402 }
  0xd0   : > { %v413_v51 = vpop.permute.xlu1 %412 }
  0xd3   : > { %v418_v0 = vpop.permute.xlu0 %417 }
  0xd4   : > { %v423_v61 = vpop.permute.xlu1 %422 }
  0xd7   : > { %v428_v12 = vpop.permute.xlu0 %427 }
  0xd8   : > { %v433_v9 = vpop.permute.xlu1 %432 }
  0xdb   : > { %v555_v25 = vpop.permute.xlu0 %554 }
  0xdc   : > { %v560_v23 = vpop.permute.xlu1 %559 }
  0xdf   : > { %v651_v33 = vpop.permute.xlu0 %650 }
  0xe0   : > { %v732_v38 = vpop.permute.xlu1 %731 }
  0xe3   : > { %v745_v47 = vpop.permute.xlu0 %744 }
 0x15e   : > { %v922_v52 = vpop.f32.mrb[0].mxu0 }
 0x15f   : > { %v507_v53 = vadd.f32 %v922_v52, %v403_v50  ;;  %v501_v54 = vpop.f32.mrb[1].mxu0 }
 0x160   : > { %v502_v55 = vadd.f32 %v501_v54, %v398_v48 }
 0x161   : > { %v541_v56 = vmax.f32 %v507_v53, 0.0 }
 0x162   : > { %v540_v57 = vmax.f32 %v502_v55, 0.0  ;;  %v925_v58 = vpop.f32.mrb[2].mxu0 }
 0x163   : > { %v517_v59 = vadd.f32 %v925_v58, %v413_v51  ;;  %v511_v60 = vpop.f32.mrb[3].mxu0 }
 0x164   : > { %v512_v62 = vadd.f32 %v511_v60, %v408_v49  ;;  %v990_v63 = vpack.c.bf16 %v541_v56, %v540_v57  ;;  %v750_v49 = vrot.slane %v745_v47, %v749_v45 }
 0x165   : > { %v543_v1 = vmax.f32 %v517_v59, 0.0 }
 0x166   : > { %v542_v2 = vmax.f32 %v512_v62, 0.0  ;;  %v928_v3 = vpop.f32.mrb[4].mxu0  ;;  %991 = vmatprep.subr.bf16.mxu1 %v990_v63 }
 0x167   : > { %v527_v4 = vadd.f32 %v928_v3, %v423_v61  ;;  %v521_v5 = vpop.f32.mrb[5].mxu0  ;;  %993 = vmatpush3.bf16.msra.mxu1 %v990_v63 }
 0x168   : > { %v994_v6 = vpack.c.bf16 %v543_v1, %v542_v2  ;;  %v522_v7 = vadd.f32 %v521_v5, %v418_v0 }
 0x169   : > { %v545_v8 = vmax.f32 %v527_v4, 0.0 }
 0x16a   : > { %v544_v10 = vmax.f32 %v522_v7, 0.0  ;;  %v931_v11 = vpop.f32.mrb[6].mxu0  ;;  %995 = vmatprep.subr.bf16.mxu1 %v994_v6 }
 0x16b   : > { %v537_v13 = vadd.f32 %v931_v11, %v433_v9  ;;  %v531_v14 = vpop.f32.mrb[7].mxu0  ;;  %997 = vmatpush3.bf16.msra.mxu1 %v994_v6 }
 0x16c   : > { %v998_v15 = vpack.c.bf16 %v545_v8, %v544_v10  ;;  %v532_v16 = vadd.f32 %v531_v14, %v428_v12 }
 0x16d   : > { %v547_v17 = vmax.f32 %v537_v13, 0.0 }
 0x16e   : > { %v546_v18 = vmax.f32 %v532_v16, 0.0  ;;  %999 = vmatprep.subr.bf16.mxu1 %v998_v15 }
 0x16f   : > { %1001 = vmatpush3.bf16.msra.mxu1 %v998_v15 }
 0x170   : > { %v1002_v19 = vpack.c.bf16 %v547_v17, %v546_v18 }
 0x172   : > { %1003 = vmatprep.subr.bf16.mxu1 %v1002_v19 }
 0x173   : > { %1005 = vmatpush3.bf16.msra.mxu1 %v1002_v19 }
 0x174   : > { %1006 = vmatprep.subr.bf16.mxu1 %v1157_v21 }
 0x176   : > { %949 = vmatmul.mubr.msk.f32.vlgmr.msra.gmra.mrb[0].mxu1 %vm562_vm0, %v549_v20 }
 0x177   : > { %955 = vmatprep.mubr.msk.f32.mxu1 %vm1158_vm1, %v1159_v22 }
 0x249   : > { %v950_v24 = vpop.f32.mrb[0].mxu1 }
 0x24a   : > { %v641_v26 = vadd.f32 %v950_v24, %v560_v23  ;;  %v635_v27 = vpop.f32.mrb[1].mxu1 }
 0x24b   : > { %v636_v28 = vadd.f32 %v635_v27, %v555_v25 }
 0x24c   : > { %v645_v29 = vmax.f32 %v641_v26, 0.0 }
 0x24d   : > { %v644_v30 = vmax.f32 %v636_v28, 0.0 }
 0x24f   : > { %v1007_v31 = vpack.c.bf16 %v645_v29, %v644_v30 }
 0x251   : > { %1008 = vmatpush3.bf16.msra.mxu1 %v1007_v31 }
 0x254   : > { %956 = vmatmul.mubr.msk.f32.vlgmr.msra.gmra.mrb[2].mxu1 %vm653_vm2, %v646_v32 }
 0x327   : > { %v723_v34 = vpop.f32.mrb[2].mxu1 }
 0x328   : > { %v724_v35 = vadd.f32 %v723_v34, %v651_v33  ;;  %v957_v36 = vpop.f32.mrb[3].mxu1 }
 0x32a   : > { %v727_v37 = vmax.f32 %v724_v35, 0.0 }
 0x32c   : > { %v734_v40 = vmul.f32 %v732_v38, %v727_v37 }
 0x32e   : > { %v735_v41 = vrot.slane %v734_v40, 4 }
 0x330   : > { %v736_v43 = vadd.f32 %v735_v41, %v734_v40 }
 0x332   : > { %v737_v44 = vrot.slane %v736_v43, 2 }
 0x334   : > { %v738_v46 = vadd.f32 %v737_v44, %v736_v43 }
 0x336   : > { %v739_v48 = vrot.slane %v738_v46, 1 }
 0x338   : > { %v740_v50 = vadd.f32 %v739_v48, %v738_v46 }
 0x33a   : > { %v751_v51 = vadd.f32 %v750_v49, %v740_v50 }
 0x33c   : > { %752 = vst [vmem:[%s357_s25] sm:$0x1] %v751_v51 }
 0x33d   : > { %1098 = shalt.err (!%p1095_p1)
}
 0x33e   : > { %s1099_s26 = scalar_lea.hbm %s1416_s27, 16  ;;  %s1103_s24 = scalar_lea.hbm %s1469_s9, 32 }
 0x33f   : > { %p1100_p3 = scmp.ne.s32.totalorder %s1416_s27, %s1099_s26  ;;  %p1104_p2 = scmp.lt.u32.totalorder %s1416_s27, %s1469_s9 }
 0x340   : > { %p1105_p7 = scmp.lt.u32.totalorder %s1103_s24, %s1099_s26  ;;  %p1107_p6 = scmp.lt.u32.totalorder %s1099_s26, %s1416_s27 }
 0x341   : > { %p1101_p4 = pnand %p1100_p3, %p1258_p9 }
 0x342   : > { %p1106_p8 = por %p1105_p7, %p1104_p2 }
 0x343   : > { %p1102_p5 = pneg %p1101_p4 }
 0x344   : > { %p1108_p10 = por %p1107_p6, %p1106_p8 }
 0x346   : > { %p1109_p11 = pnand %p1108_p10, %p1102_p5 }
 0x348   : > { %1112 = shalt.err (!%p1109_p11)
}
 0x349   : > { %1010 = dma.vmem_to_hbm [thread:$0]  (%p1258_p9), %s1418_s28, 16, %s1416_s27, %s754_s29  }
 0x34a PF: > { %s778_s15 = sand.u32 1, %s1139_s11   ;;  %p1475_p13 = scmp.ne.s32.totalorder %s1474_s22, 0 }
 0x34b   : > { %p1476_p12 = scmp.ge.s32.totalorder %s1151_s14, 2  ;;  %s779_s20 = scalar_lea.sflag [#allocation5], %s778_s15 }
 0x34d   : > { %p1013_p0 = pnand %p1476_p12, %p1475_p13 }
 0x34f   : > { %1134 = dma.done.wait (!%p1013_p0), %s779_s20, 16  }
 0x350   : > { %1136 = vsyncadd (!%p1013_p0), %s779_s20, 4294967280  ;;  %s1477_s18 = sld [smem:[#allocation9_spill]]  ;;  %p24_p1 = scmp.ge.s32.totalorder %s1239_s16, 4  }
 0x351   : > { %s1478_s11 = smov %s1143_s12  ;;  %s1479_s12 = smov %s1147_s13 }
 0x352   : > { %s1481_s14 = smov %s1239_s16  ;;  %26 = sbr.rel (!%p24_p1) target bundleno = 8 (0x8), region = 101 }
 0x356   : > { %s1480_s13 = smov %s1477_s18 }
 0x359   :  { %783 = vsyncpa [#allocation4], 1 }
 0x35a   :  { %785 = vsyncpa [#allocation4 + $0x1], 1 }
 0x35b   :  { %786 = vsyncpa [#allocation5], 1 }
 0x35c   :  { %788 = vsyncpa [#allocation5 + $0x1], 1 }

</bundles_post_ra>
